<compile_context>
chip_gen: v7x
topology: tpu7x:2x2x1
jax: 0.10.0
libtpu: 0.0.40
codegen_flags: <defaults>
</compile_context>

<pallas_src>
import functools

import jax
import jax.numpy as jnp
from jax.experimental import pallas as pl
from jax.experimental.pallas import tpu as pltpu


def _attn_ff_kernel(xq_ref, xkv_ref, wq_ref, wk_ref, wv_ref, wo_ref, bo_ref,
                    w1_ref, b1_ref, w2_ref, b2_ref, o_ref,
                    *, n_head: int, head_size: int, approx_recip: bool):
    tq = xq_ref.shape[0]          # query rows handled by this grid step
    T = xkv_ref.shape[0]          # full sequence length (keys/values)
    H, D = n_head, head_size
    C = H * D
    cd = wq_ref.dtype             # compute dtype for MXU inputs (f32 or bf16)
    qi = pl.program_id(1)

    x_q = xq_ref[...]                       # (tq, C), original dtype
    xq_c = x_q.astype(cd)
    xkv_c = xkv_ref[...].astype(cd)         # (T, C)

    # ---- projections (scale folded into q once: saves H*T*T VALU muls) ----
    scale = jnp.float32(head_size ** -0.5)
    q = jnp.dot(xq_c, wq_ref[...], preferred_element_type=jnp.float32) * scale
    k = jnp.dot(xkv_c, wk_ref[...], preferred_element_type=jnp.float32)
    v = jnp.dot(xkv_c, wv_ref[...], preferred_element_type=jnp.float32)

    # ---- batched-head layout: (H, seq, D), single dot_general per phase ----
    qh = jnp.transpose(q.reshape(tq, H, D), (1, 0, 2)).astype(cd)   # (H, tq, D)
    kh = jnp.transpose(k.reshape(T, H, D), (1, 0, 2)).astype(cd)    # (H, T, D)
    vh = jnp.transpose(v.reshape(T, H, D), (1, 0, 2)).astype(cd)    # (H, T, D)

    s = jnp.einsum("hqd,hkd->hqk", qh, kh,
                   preferred_element_type=jnp.float32)              # (H, tq, T)

    # causal mask with global row offset; finite fill avoids inf-inf NaN hazards
    row = qi * tq + jax.lax.broadcasted_iota(jnp.int32, (H, tq, T), 1)
    col = jax.lax.broadcasted_iota(jnp.int32, (H, tq, T), 2)
    s = jnp.where(row >= col, s, jnp.float32(-1e30))

    m = jnp.max(s, axis=-1, keepdims=True)
    p = jnp.exp(s - m)
    denom = jnp.sum(p, axis=-1, keepdims=True)
    p = p * pl.reciprocal(denom, approx=approx_recip)               # EUP slot

    attn = jnp.einsum("hqk,hkd->hqd", p.astype(cd), vh,
                      preferred_element_type=jnp.float32)           # (H, tq, D)
    attn = jnp.transpose(attn, (1, 0, 2)).reshape(tq, C)

    sa = jnp.dot(attn.astype(cd), wo_ref[...],
                 preferred_element_type=jnp.float32) + bo_ref[...]
    x1 = x_q.astype(jnp.float32) + sa                               # residual 1

    # ---- feed-forward on the same query rows ----
    h1 = jnp.dot(x1.astype(cd), w1_ref[...],
                 preferred_element_type=jnp.float32) + b1_ref[...]
    h1 = jnp.maximum(h1, 0.0)
    ff = jnp.dot(h1.astype(cd), w2_ref[...],
                 preferred_element_type=jnp.float32) + b2_ref[...]

    o_ref[...] = (x1 + ff).astype(o_ref.dtype)                      # residual 2


def _pick_tq(T: int) -> int:
    for cand in (256, 128, 64, 32, 16, 8):
        if T % cand == 0:
            return cand
    return T  # falls back to full sequence (always legal: full-dim block)


def attn_ff_block(x, params, *, n_head: int, compute_dtype=None, tq=None):
    """compute_dtype=None keeps param dtype; jnp.bfloat16 enables bf16 MXU path."""
    B, T, C = x.shape
    head_size = C // n_head
    wq, wk, wv, wo, bo, w1, b1, w2, b2 = params

    if compute_dtype is not None:
        wq, wk, wv, wo, w1, w2 = (w.astype(compute_dtype)
                                  for w in (wq, wk, wv, wo, w1, w2))
    approx_recip = compute_dtype is not None and \
        jnp.dtype(compute_dtype) != jnp.dtype(jnp.float32)

    # biases stay f32; added after the f32 accumulation
    bo = bo.reshape(1, C).astype(jnp.float32)
    b1 = b1.reshape(1, 4 * C).astype(jnp.float32)
    b2 = b2.reshape(1, C).astype(jnp.float32)

    if tq is None:
        tq = _pick_tq(T)
    nq = T // tq

    kernel = functools.partial(_attn_ff_kernel, n_head=n_head,
                               head_size=head_size, approx_recip=approx_recip)

    def wspec(shape):
        return pl.BlockSpec(shape, lambda b, q: (0, 0))

    itemsize = x.dtype.itemsize
    weights = (wq, wk, wv, wo, bo, w1, b1, w2, b2)
    cost = pl.CostEstimate(
        flops=int(2 * B * T * C * (12 * C + 2 * T)),
        transcendentals=int(B * n_head * T * T),
        bytes_accessed=int(3 * x.size * itemsize +
                           sum(int(w.size) * w.dtype.itemsize for w in weights)),
    )

    return pl.pallas_call(
        kernel,
        out_shape=jax.ShapeDtypeStruct((B, T, C), x.dtype),
        grid_spec=pltpu.PrefetchScalarGridSpec(
            num_scalar_prefetch=0,
            grid=(B, nq),
            in_specs=[
                pl.BlockSpec((None, tq, C), lambda b, q: (b, q, 0)),  # x (q rows)
                pl.BlockSpec((None, T, C), lambda b, q: (b, 0, 0)),   # x (k/v rows)
                wspec((C, C)),                                        # wq
                wspec((C, C)),                                        # wk
                wspec((C, C)),                                        # wv
                wspec((C, C)),                                        # wo (proj)
                wspec((1, C)),                                        # bo
                wspec((C, 4 * C)),                                    # w1
                wspec((1, 4 * C)),                                    # b1
                wspec((4 * C, C)),                                    # w2
                wspec((1, C)),                                        # b2
            ],
            out_specs=pl.BlockSpec((None, tq, C), lambda b, q: (b, q, 0)),
        ),
        compiler_params=pltpu.CompilerParams(
            dimension_semantics=("parallel", "parallel"),
            vmem_limit_bytes=32 * 1024 * 1024),
        cost_estimate=cost,
    )(x, x, wq, wk, wv, wo, bo, w1, b1, w2, b2)


def init_params(key, n_emb: int):
    ks = jax.random.split(key, 9)
    s = 0.02
    wq = jax.random.normal(ks[0], (n_emb, n_emb), jnp.float32) * s
    wk = jax.random.normal(ks[1], (n_emb, n_emb), jnp.float32) * s
    wv = jax.random.normal(ks[2], (n_emb, n_emb), jnp.float32) * s
    wo = jax.random.normal(ks[3], (n_emb, n_emb), jnp.float32) * s
    bo = jax.random.normal(ks[4], (n_emb,), jnp.float32) * s
    w1 = jax.random.normal(ks[5], (n_emb, 4 * n_emb), jnp.float32) * s
    b1 = jax.random.normal(ks[6], (4 * n_emb,), jnp.float32) * s
    w2 = jax.random.normal(ks[7], (4 * n_emb, n_emb), jnp.float32) * s
    b2 = jax.random.normal(ks[8], (n_emb,), jnp.float32) * s
    return (wq, wk, wv, wo, bo, w1, b1, w2, b2)


def reference_jax(x, params, *, n_head: int):
    """Pure-JAX reference matching the PyTorch forward semantics."""
    wq, wk, wv, wo, bo, w1, b1, w2, b2 = params
    B, T, C = x.shape
    hd = C // n_head
    q = (x @ wq).reshape(B, T, n_head, hd).transpose(0, 2, 1, 3)
    k = (x @ wk).reshape(B, T, n_head, hd).transpose(0, 2, 1, 3)
    v = (x @ wv).reshape(B, T, n_head, hd).transpose(0, 2, 1, 3)
    s = jnp.einsum("bhqd,bhkd->bhqk", q, k) * (hd ** -0.5)
    mask = jnp.tril(jnp.ones((T, T), bool))
    s = jnp.where(mask, s, -jnp.inf)
    p = jax.nn.softmax(s, axis=-1)
    attn = jnp.einsum("bhqk,bhkd->bhqd", p, v).transpose(0, 2, 1, 3).reshape(B, T, C)
    x1 = x + (attn @ wo + bo)
    ff = jnp.maximum(x1 @ w1 + b1, 0.0) @ w2 + b2
    return x1 + ff


if __name__ == "__main__":
    B, T, n_emb, n_head = 2, 8, 32, 4

    key = jax.random.PRNGKey(0)
    kx, kp = jax.random.split(key)
    x = jax.random.normal(kx, (B, T, n_emb), jnp.float32)
    params = init_params(kp, n_emb)

    ref = reference_jax(x, params, n_head=n_head)

    # f32 compute path: tight check against the reference
    out = jax.block_until_ready(attn_ff_block(x, params, n_head=n_head))
    assert out.shape == (B, T, n_emb)
    assert jnp.allclose(out, ref, atol=1e-4, rtol=1e-4), "f32 mismatch vs reference"

    # bf16 MXU path (production config): looser tolerance for mixed precision
    out_bf16 = jax.block_until_ready(
        attn_ff_block(x, params, n_head=n_head, compute_dtype=jnp.bfloat16))
    assert jnp.allclose(out_bf16, ref, atol=2e-2, rtol=2e-2), "bf16 mismatch vs reference"

    print("KERNEL_OK")
</pallas_src>

<mosaic_0001>
module attributes {stable_mosaic.version = 11 : i64} {
  func.func @_attn_ff_kernel(%arg0: i32, %arg1: i32, %arg2: memref<1x8x32xf32, #tpu.memory_space<vmem>>, %arg3: memref<1x8x32xf32, #tpu.memory_space<vmem>>, %arg4: memref<32x32xf32, #tpu.memory_space<vmem>>, %arg5: memref<32x32xf32, #tpu.memory_space<vmem>>, %arg6: memref<32x32xf32, #tpu.memory_space<vmem>>, %arg7: memref<32x32xf32, #tpu.memory_space<vmem>>, %arg8: memref<1x32xf32, #tpu.memory_space<vmem>>, %arg9: memref<32x128xf32, #tpu.memory_space<vmem>>, %arg10: memref<1x128xf32, #tpu.memory_space<vmem>>, %arg11: memref<128x32xf32, #tpu.memory_space<vmem>>, %arg12: memref<1x32xf32, #tpu.memory_space<vmem>>, %arg13: memref<1x8x32xf32, #tpu.memory_space<vmem>>) attributes {dimension_semantics = [#tpu.dimension_semantics<parallel>, #tpu.dimension_semantics<parallel>], iteration_bounds = array<i64: 2, 1>, scalar_prefetch = 0 : i64, scratch_operands = 0 : i64, tpu.core_type = #tpu.core_type<tc>, window_params = [{transform_indices = @transform_0, window_bounds = array<i64: 1, 8, 32>}, {transform_indices = @transform_1, window_bounds = array<i64: 1, 8, 32>}, {pipeline_mode = #tpu.pipeline_mode<synchronous>, transform_indices = @transform_2, window_bounds = array<i64: 32, 32>}, {pipeline_mode = #tpu.pipeline_mode<synchronous>, transform_indices = @transform_3, window_bounds = array<i64: 32, 32>}, {pipeline_mode = #tpu.pipeline_mode<synchronous>, transform_indices = @transform_4, window_bounds = array<i64: 32, 32>}, {pipeline_mode = #tpu.pipeline_mode<synchronous>, transform_indices = @transform_5, window_bounds = array<i64: 32, 32>}, {pipeline_mode = #tpu.pipeline_mode<synchronous>, transform_indices = @transform_6, window_bounds = array<i64: 1, 32>}, {pipeline_mode = #tpu.pipeline_mode<synchronous>, transform_indices = @transform_7, window_bounds = array<i64: 32, 128>}, {pipeline_mode = #tpu.pipeline_mode<synchronous>, transform_indices = @transform_8, window_bounds = array<i64: 1, 128>}, {pipeline_mode = #tpu.pipeline_mode<synchronous>, transform_indices = @transform_9, window_bounds = array<i64: 128, 32>}, {pipeline_mode = #tpu.pipeline_mode<synchronous>, transform_indices = @transform_10, window_bounds = array<i64: 1, 32>}, {transform_indices = @transform_11, window_bounds = array<i64: 1, 8, 32>}]} {
    %c0 = arith.constant 0 : index
    %c0_0 = arith.constant 0 : index
    %c0_1 = arith.constant 0 : index
    %0 = vector.load %arg2[%c0, %c0_0, %c0_1] : memref<1x8x32xf32, #tpu.memory_space<vmem>>, vector<1x8x32xf32>
    %1 = vector.shape_cast %0 : vector<1x8x32xf32> to vector<8x32xf32>
    %c0_2 = arith.constant 0 : index
    %c0_3 = arith.constant 0 : index
    %c0_4 = arith.constant 0 : index
    %2 = vector.load %arg3[%c0_2, %c0_3, %c0_4] : memref<1x8x32xf32, #tpu.memory_space<vmem>>, vector<1x8x32xf32>
    %3 = vector.shape_cast %2 : vector<1x8x32xf32> to vector<8x32xf32>
    %c0_5 = arith.constant 0 : index
    %c0_6 = arith.constant 0 : index
    %4 = vector.load %arg4[%c0_5, %c0_6] : memref<32x32xf32, #tpu.memory_space<vmem>>, vector<32x32xf32>
    %cst = arith.constant dense<0.000000e+00> : vector<8x32xf32>
    %5 = tpu.matmul %1, %4, %cst {dimension_numbers = #tpu.dot_dimension_numbers<[1], [0], [0], [1], [0, 0, 1, 1], [], []>} : vector<8x32xf32>, vector<32x32xf32>, vector<8x32xf32> -> vector<8x32xf32>
    %cst_7 = arith.constant 0.353553385 : f32
    %6 = vector.broadcast %cst_7 : f32 to vector<8x32xf32>
    %7 = arith.mulf %5, %6 : vector<8x32xf32>
    %c0_8 = arith.constant 0 : index
    %c0_9 = arith.constant 0 : index
    %8 = vector.load %arg5[%c0_8, %c0_9] : memref<32x32xf32, #tpu.memory_space<vmem>>, vector<32x32xf32>
    %cst_10 = arith.constant dense<0.000000e+00> : vector<8x32xf32>
    %9 = tpu.matmul %3, %8, %cst_10 {dimension_numbers = #tpu.dot_dimension_numbers<[1], [0], [0], [1], [0, 0, 1, 1], [], []>} : vector<8x32xf32>, vector<32x32xf32>, vector<8x32xf32> -> vector<8x32xf32>
    %c0_11 = arith.constant 0 : index
    %c0_12 = arith.constant 0 : index
    %10 = vector.load %arg6[%c0_11, %c0_12] : memref<32x32xf32, #tpu.memory_space<vmem>>, vector<32x32xf32>
    %cst_13 = arith.constant dense<0.000000e+00> : vector<8x32xf32>
    %11 = tpu.matmul %3, %10, %cst_13 {dimension_numbers = #tpu.dot_dimension_numbers<[1], [0], [0], [1], [0, 0, 1, 1], [], []>} : vector<8x32xf32>, vector<32x32xf32>, vector<8x32xf32> -> vector<8x32xf32>
    %12 = vector.shape_cast %7 : vector<8x32xf32> to vector<8x4x8xf32>
    %13 = tpu.transpose %12, [1, 0, 2] : vector<8x4x8xf32> -> vector<4x8x8xf32>
    %14 = vector.shape_cast %9 : vector<8x32xf32> to vector<8x4x8xf32>
    %15 = tpu.transpose %14, [1, 0, 2] : vector<8x4x8xf32> -> vector<4x8x8xf32>
    %16 = vector.shape_cast %11 : vector<8x32xf32> to vector<8x4x8xf32>
    %17 = tpu.transpose %16, [1, 0, 2] : vector<8x4x8xf32> -> vector<4x8x8xf32>
    "tpu.trace_start"() <{level = 10 : i32, message = "hqd,hkd->hqk"}> : () -> ()
    %cst_14 = arith.constant dense<0.000000e+00> : vector<4x8x8xf32>
    %18 = tpu.matmul %13, %15, %cst_14 {dimension_numbers = #tpu.dot_dimension_numbers<[2], [2], [1], [1], [0, 0, 0, 1, 1, 1], [0], [0]>} : vector<4x8x8xf32>, vector<4x8x8xf32>, vector<4x8x8xf32> -> vector<4x8x8xf32>
    "tpu.trace_stop"() : () -> ()
    %c8_i32 = arith.constant 8 : i32
    %19 = arith.muli %arg1, %c8_i32 : i32
    %20 = tpu.iota {dimensions = array<i32: 1>} : vector<4x8x8xi32>
    %21 = vector.broadcast %19 : i32 to vector<4x8x8xi32>
    %22 = arith.addi %21, %20 : vector<4x8x8xi32>
    %23 = tpu.iota {dimensions = array<i32: 2>} : vector<4x8x8xi32>
    %24 = arith.cmpi sge, %22, %23 : vector<4x8x8xi32>
    %cst_15 = arith.constant -1.000000e+30 : f32
    %25 = vector.broadcast %cst_15 : f32 to vector<4x8x8xf32>
    %26 = arith.select %24, %18, %25 : vector<4x8x8xi1>, vector<4x8x8xf32>
    %cst_16 = arith.constant dense<0xFF800000> : vector<4x8xf32>
    %27 = vector.multi_reduction <maximumf>, %26, %cst_16 [2] : vector<4x8x8xf32> to vector<4x8xf32>
    %28 = vector.shape_cast %27 : vector<4x8xf32> to vector<4x8x1xf32>
    %29 = vector.broadcast %28 : vector<4x8x1xf32> to vector<4x8x8xf32>
    %30 = arith.subf %26, %29 : vector<4x8x8xf32>
    %31 = math.exp %30 : vector<4x8x8xf32>
    %cst_17 = arith.constant dense<0.000000e+00> : vector<4x8xf32>
    %32 = vector.multi_reduction <add>, %31, %cst_17 [2] : vector<4x8x8xf32> to vector<4x8xf32>
    %33 = vector.shape_cast %32 : vector<4x8xf32> to vector<4x8x1xf32>
    %34 = tpu.reciprocal %33 : vector<4x8x1xf32> -> vector<4x8x1xf32>
    %35 = vector.broadcast %34 : vector<4x8x1xf32> to vector<4x8x8xf32>
    %36 = arith.mulf %31, %35 : vector<4x8x8xf32>
    "tpu.trace_start"() <{level = 10 : i32, message = "hqk,hkd->hqd"}> : () -> ()
    %cst_18 = arith.constant dense<0.000000e+00> : vector<4x8x8xf32>
    %37 = tpu.matmul %36, %17, %cst_18 {dimension_numbers = #tpu.dot_dimension_numbers<[2], [1], [1], [2], [0, 0, 0, 1, 1, 2], [0], [0]>} : vector<4x8x8xf32>, vector<4x8x8xf32>, vector<4x8x8xf32> -> vector<4x8x8xf32>
    "tpu.trace_stop"() : () -> ()
    %38 = tpu.transpose %37, [1, 0, 2] : vector<4x8x8xf32> -> vector<8x4x8xf32>
    %39 = vector.shape_cast %38 : vector<8x4x8xf32> to vector<8x32xf32>
    %c0_19 = arith.constant 0 : index
    %c0_20 = arith.constant 0 : index
    %40 = vector.load %arg7[%c0_19, %c0_20] : memref<32x32xf32, #tpu.memory_space<vmem>>, vector<32x32xf32>
    %cst_21 = arith.constant dense<0.000000e+00> : vector<8x32xf32>
    %41 = tpu.matmul %39, %40, %cst_21 {dimension_numbers = #tpu.dot_dimension_numbers<[1], [0], [0], [1], [0, 0, 1, 1], [], []>} : vector<8x32xf32>, vector<32x32xf32>, vector<8x32xf32> -> vector<8x32xf32>
    %c0_22 = arith.constant 0 : index
    %c0_23 = arith.constant 0 : index
    %42 = vector.load %arg8[%c0_22, %c0_23] : memref<1x32xf32, #tpu.memory_space<vmem>>, vector<1x32xf32>
    %43 = vector.broadcast %42 : vector<1x32xf32> to vector<8x32xf32>
    %44 = arith.addf %41, %43 : vector<8x32xf32>
    %45 = arith.addf %1, %44 : vector<8x32xf32>
    %c0_24 = arith.constant 0 : index
    %c0_25 = arith.constant 0 : index
    %46 = vector.load %arg9[%c0_24, %c0_25] : memref<32x128xf32, #tpu.memory_space<vmem>>, vector<32x128xf32>
    %cst_26 = arith.constant dense<0.000000e+00> : vector<8x128xf32>
    %47 = tpu.matmul %45, %46, %cst_26 {dimension_numbers = #tpu.dot_dimension_numbers<[1], [0], [0], [1], [0, 0, 1, 1], [], []>} : vector<8x32xf32>, vector<32x128xf32>, vector<8x128xf32> -> vector<8x128xf32>
    %c0_27 = arith.constant 0 : index
    %c0_28 = arith.constant 0 : index
    %48 = vector.load %arg10[%c0_27, %c0_28] : memref<1x128xf32, #tpu.memory_space<vmem>>, vector<1x128xf32>
    %49 = vector.broadcast %48 : vector<1x128xf32> to vector<8x128xf32>
    %50 = arith.addf %47, %49 : vector<8x128xf32>
    %cst_29 = arith.constant 0.000000e+00 : f32
    %51 = vector.broadcast %cst_29 : f32 to vector<8x128xf32>
    %52 = arith.maximumf %50, %51 : vector<8x128xf32>
    %c0_30 = arith.constant 0 : index
    %c0_31 = arith.constant 0 : index
    %53 = vector.load %arg11[%c0_30, %c0_31] : memref<128x32xf32, #tpu.memory_space<vmem>>, vector<128x32xf32>
    %cst_32 = arith.constant dense<0.000000e+00> : vector<8x32xf32>
    %54 = tpu.matmul %52, %53, %cst_32 {dimension_numbers = #tpu.dot_dimension_numbers<[1], [0], [0], [1], [0, 0, 1, 1], [], []>} : vector<8x128xf32>, vector<128x32xf32>, vector<8x32xf32> -> vector<8x32xf32>
    %c0_33 = arith.constant 0 : index
    %c0_34 = arith.constant 0 : index
    %55 = vector.load %arg12[%c0_33, %c0_34] : memref<1x32xf32, #tpu.memory_space<vmem>>, vector<1x32xf32>
    %56 = vector.broadcast %55 : vector<1x32xf32> to vector<8x32xf32>
    %57 = arith.addf %54, %56 : vector<8x32xf32>
    %58 = arith.addf %45, %57 : vector<8x32xf32>
    %c0_35 = arith.constant 0 : index
    %c0_36 = arith.constant 0 : index
    %c0_37 = arith.constant 0 : index
    %59 = vector.load %arg13[%c0_35, %c0_36, %c0_37] : memref<1x8x32xf32, #tpu.memory_space<vmem>>, vector<1x8x32xf32>
    %60 = vector.shape_cast %59 : vector<1x8x32xf32> to vector<8x32xf32>
    %61 = vector.shape_cast %58 : vector<8x32xf32> to vector<1x8x32xf32>
    tpu.vector_store %arg13[%c0_35, %c0_36, %c0_37], %61 {strides = array<i32>} : memref<1x8x32xf32, #tpu.memory_space<vmem>>, vector<1x8x32xf32>,
    return
  }
  func.func @transform_0(%arg0: i32, %arg1: i32) -> (i32, i32, i32) {
    %c0_i32 = arith.constant 0 : i32
    %c0_i32_0 = arith.constant 0 : i32
    return %arg0, %arg1, %c0_i32 : i32, i32, i32
  }
  func.func @transform_1(%arg0: i32, %arg1: i32) -> (i32, i32, i32) {
    %c0_i32 = arith.constant 0 : i32
    %c0_i32_0 = arith.constant 0 : i32
    %c0_i32_1 = arith.constant 0 : i32
    return %arg0, %c0_i32, %c0_i32_0 : i32, i32, i32
  }
  func.func @transform_2(%arg0: i32, %arg1: i32) -> (i32, i32) {
    %c0_i32 = arith.constant 0 : i32
    %c0_i32_0 = arith.constant 0 : i32
    %c0_i32_1 = arith.constant 0 : i32
    return %c0_i32, %c0_i32_0 : i32, i32
  }
  func.func @transform_3(%arg0: i32, %arg1: i32) -> (i32, i32) {
    %c0_i32 = arith.constant 0 : i32
    %c0_i32_0 = arith.constant 0 : i32
    %c0_i32_1 = arith.constant 0 : i32
    return %c0_i32, %c0_i32_0 : i32, i32
  }
  func.func @transform_4(%arg0: i32, %arg1: i32) -> (i32, i32) {
    %c0_i32 = arith.constant 0 : i32
    %c0_i32_0 = arith.constant 0 : i32
    %c0_i32_1 = arith.constant 0 : i32
    return %c0_i32, %c0_i32_0 : i32, i32
  }
  func.func @transform_5(%arg0: i32, %arg1: i32) -> (i32, i32) {
    %c0_i32 = arith.constant 0 : i32
    %c0_i32_0 = arith.constant 0 : i32
    %c0_i32_1 = arith.constant 0 : i32
    return %c0_i32, %c0_i32_0 : i32, i32
  }
  func.func @transform_6(%arg0: i32, %arg1: i32) -> (i32, i32) {
    %c0_i32 = arith.constant 0 : i32
    %c0_i32_0 = arith.constant 0 : i32
    %c0_i32_1 = arith.constant 0 : i32
    return %c0_i32, %c0_i32_0 : i32, i32
  }
  func.func @transform_7(%arg0: i32, %arg1: i32) -> (i32, i32) {
    %c0_i32 = arith.constant 0 : i32
    %c0_i32_0 = arith.constant 0 : i32
    %c0_i32_1 = arith.constant 0 : i32
    return %c0_i32, %c0_i32_0 : i32, i32
  }
  func.func @transform_8(%arg0: i32, %arg1: i32) -> (i32, i32) {
    %c0_i32 = arith.constant 0 : i32
    %c0_i32_0 = arith.constant 0 : i32
    %c0_i32_1 = arith.constant 0 : i32
    return %c0_i32, %c0_i32_0 : i32, i32
  }
  func.func @transform_9(%arg0: i32, %arg1: i32) -> (i32, i32) {
    %c0_i32 = arith.constant 0 : i32
    %c0_i32_0 = arith.constant 0 : i32
    %c0_i32_1 = arith.constant 0 : i32
    return %c0_i32, %c0_i32_0 : i32, i32
  }
  func.func @transform_10(%arg0: i32, %arg1: i32) -> (i32, i32) {
    %c0_i32 = arith.constant 0 : i32
    %c0_i32_0 = arith.constant 0 : i32
    %c0_i32_1 = arith.constant 0 : i32
    return %c0_i32, %c0_i32_0 : i32, i32
  }
  func.func @transform_11(%arg0: i32, %arg1: i32) -> (i32, i32, i32) {
    %c0_i32 = arith.constant 0 : i32
    %c0_i32_0 = arith.constant 0 : i32
    return %arg0, %arg1, %c0_i32 : i32, i32, i32
  }
}

</mosaic_0001>

<bundles_post_ra>
// kernel: tpu_custom_call.1
= control target key start
LH: loop header
LB: loop body
LE: loop exit
PB: predicated region body
PF: predicated region fallthrough
CT: control target
= control target key end

     0   :  { %s3464_s0 = inlined_call_operand.hbm [shape: f32[2,8,32], index: 0, kind: input, shape index: {}]   ;;  %s3465_s1 = inlined_call_operand.hbm [shape: f32[2,8,32], index: 1, kind: input, shape index: {}]   ;;  %s3466_s2 = inlined_call_operand.vmem [shape: f32[32,32], index: 2, kind: input, shape index: {}]   ;;  %s3467_s3 = inlined_call_operand.vmem [shape: f32[32,32], index: 3, kind: input, shape index: {}]   ;;  %s3468_s4 = inlined_call_operand.vmem [shape: f32[32,32], index: 4, kind: input, shape index: {}]   ;;  %s3469_s5 = inlined_call_operand.vmem [shape: f32[32,32], index: 5, kind: input, shape index: {}]   ;;  %s3470_s6 = inlined_call_operand.vmem [shape: f32[1,32], index: 6, kind: input, shape index: {}]   ;;  %s3471_s7 = inlined_call_operand.vmem [shape: f32[32,128], index: 7, kind: input, shape index: {}]   ;;  %s3472_s8 = inlined_call_operand.vmem [shape: f32[1,128], index: 8, kind: input, shape index: {}]   ;;  %s3473_s9 = inlined_call_operand.vmem [shape: f32[128,32], index: 9, kind: input, shape index: {}]   ;;  %s3474_s10 = inlined_call_operand.vmem [shape: f32[1,32], index: 10, kind: input, shape index: {}]   ;;  %s3475_s11 = inlined_call_operand.hbm [shape: f32[2,8,32], index: 11, kind: output, shape index: {}]  }
   0x1   :  { %3484 = sst [smem:[#allocation16_spill]] %s3464_s0 }
   0x2   :  { %16 = vsyncpa [#allocation3], 0 }
   0x3   :  { %18 = vsyncpa [#allocation3 + $0x1], 0 }
   0x4   :  { %19 = vsyncpa [#allocation6], 0 }
   0x5   :  { %21 = vsyncpa [#allocation6 + $0x1], 0 }
   0x6   :  { %22 = vsyncpa [#allocation4], 0 }
   0x7   :  { %24 = vsyncpa [#allocation4 + $0x1], 0  ;;  %s2917_s17 = smov 0   ;;  %s2919_s18 = smov 0  }
   0x8   :  { %s2921_s19 = smov 0   ;;  %s2923_s20 = smov 0  }
   0x9   :  { %s2925_s21 = smov 0   ;;  %s2927_s22 = smov 0  }
   0xa LB: > { %3485 = sst [smem:[#allocation11_spill]] %s2829_s19  ;;  %s2315_s23 = sadd.s32 4294967295, %s2841_s22   ;;  %s2841_s22 = sphi %s2927_s22, %s30_s22   ;;  %s2837_s21 = sphi %s2925_s21, %s3510_s21   ;;  %s2833_s20 = sphi %s2923_s20, %s3509_s20   ;;  %s2829_s19 = sphi %s2921_s19, %s3508_s19   ;;  %s2825_s18 = sphi %s2919_s18, %s3512_s18   ;;  %s2821_s17 = sphi %s2917_s17, %s3511_s17  }
   0xb   : > { %3486 = sst [smem:[#allocation12_spill]] %s2837_s21  ;;  %s2316_s24 = sadd.s32 4294967294, %s2841_s22  }
   0xc   : > { %s42_s25 = sadd.s32 1, %s2837_s21  ;;  %s51_s26 = sadd.s32 1, %s2829_s19 }
   0xd   : > { %p44_p0 = scmp.ge.s32.totalorder %s42_s25, 2  ;;  %p58_p1 = scmp.ne.s32.totalorder %s2829_s19, %s2825_s18 }
   0xe   : > { %p59_p2 = scmp.eq.s32.totalorder %s2841_s22, 0  ;;  %p64_p3 = scmp.ne.s32.totalorder %s2825_s18, %s2821_s17 }
   0xf   : > { %s3514_s25 = smov (%p44_p0, %s42_s25), 0  ;;  %p65_p5 = scmp.eq.s32.totalorder %s2315_s23, 0 }
  0x10   : > { %3487 = sst [smem:[#allocation13_spill]] %s3514_s25  ;;  %p2958_p4 = por %p59_p2, %p58_p1 }
  0x11   : > { %s46_s28 = ssub.s32 %s2837_s21, %s3514_s25  ;;  %p305_p6 = scmp.eq.s32.totalorder %s2315_s23, 1 }
  0x12   : > { %p49_p7 = scmp.eq.s32.totalorder %s46_s28, 0  ;;  %p2964_p8 = por %p65_p5, %p64_p3 }
  0x13   : > { %p2968_p9 = por %p305_p6, %p58_p1  ;;  %p311_p10 = scmp.eq.s32.totalorder %s2316_s24, 1 }
  0x14   : > { %s3489_s29 = scalar_select %p2964_p8, 1, 0 }
  0x15   : > { %s3490_s30 = scalar_select %p2968_p9, 1, 0 }
  0x16   : > { %s2973_s12 = scalar_select %p49_p7, %s2829_s19, %s51_s26  }
  0x17   : > { %p2975_p11 = por %p311_p10, %p64_p3  ;;  %p2618_p13 = scmp.lt.s32.totalorder %s2841_s22, 2 }
  0x18   : > { %3491 = sst [smem:[#allocation14_spill]] %s2973_s12  ;;  %s2982_s14 = sand.u32 1, %s2829_s19  }
  0x19   : > { %s3492_s13 = scalar_select %p2975_p11, 1, 0 }
  0x1a   : > { %s3477_s15 = sshll.u32 %s2982_s14, 3  ;;  %s3478_s16 = sshll.u32 %s2837_s21, 7 }
  0x1b   : > { %3493 = sst [smem:[#allocation15_spill]] %s3492_s13  ;;  %s3494_s0 = sld [smem:[#allocation16_spill]] }
  0x1c   : > { %s362_s26 = scalar_lea.vmem [#allocation2], %s3477_s15  ;;  %p2999_p0 = pnand %p2618_p13, %p2958_p4 }
  0x1d   : > { %s370_s25 = sshll.u32 %s362_s26, 4  ;;  %s359_s23 = scalar_lea.sflag [#allocation3], %s2982_s14  ;;  %s2995_s25 = int_to_ptr.vmem [resolvable:$true] %s370_s25 }
  0x1e   : > { %p2697_p5 = pneg %p2999_p0 }
  0x21   : > { %s2991_s24 = scalar_lea.hbm %s3494_s0, %s3478_s16  ;;  %s2700_s27 = scalar_lea.hbm %s3494_s0, 256 }
  0x22   : > { %s2695_s28 = scalar_lea.hbm %s2991_s24, 128  ;;  %p2701_p4 = scmp.lt.u32.totalorder %s2991_s24, %s3494_s0 }
  0x23   : > { %p2696_p3 = scmp.ne.s32.totalorder %s2991_s24, %s2695_s28  ;;  %p2702_p10 = scmp.lt.u32.totalorder %s2700_s27, %s2695_s28 }
  0x24   : > { %p2704_p12 = scmp.lt.u32.totalorder %s2695_s28, %s2991_s24 }
  0x25   : > { %p2698_p6 = pnand %p2697_p5, %p2696_p3  ;;  %p2703_p13 = por %p2702_p10, %p2701_p4 }
  0x27   : > { %p2699_p7 = pneg %p2698_p6  ;;  %p2705_p1 = por %p2704_p12, %p2703_p13 }
  0x29   : > { %p2706_p2 = pnand %p2705_p1, %p2699_p7 }
  0x2b   : > { %2709 = shalt.err (!%p2706_p2)
}
  0x2c   : > { %s2710_s13 = scalar_lea.vmem %s2995_s25, 128  ;;  %s2843_s15 = smov [#allocation2]  }
  0x2d   : > { %p2711_p3 = scmp.ne.s32.totalorder %s2995_s25, %s2710_s13  ;;  %s2715_s26 = sshll.u32 %s2843_s15, 4  ;;  %s2716_s26 = int_to_ptr.vmem [resolvable:$false] %s2715_s26 }
  0x2e   : > { %s2717_s19 = scalar_lea.vmem %s2716_s26, 256  ;;  %p2718_p9 = scmp.lt.s32.totalorder %s2995_s25, %s2716_s26 }
  0x2f   : > { %p2713_p6 = pnand %p2711_p3, %p2697_p5  ;;  %p2719_p4 = scmp.lt.s32.totalorder %s2717_s19, %s2710_s13 }
  0x31   : > { %p2714_p11 = pneg %p2713_p6  ;;  %p2720_p10 = por %p2719_p4, %p2718_p9 }
  0x33   : > { %p2721_p12 = pnand %p2720_p10, %p2714_p11 }
  0x35   : > { %2724 = shalt.err (!%p2721_p12)
}
  0x36   : > { %2610 = dma.hbm_to_vmem [thread:$0]  (!%p2999_p0), %s2991_s24, 128, %s2995_s25, %s359_s23  }
  0x37   : > { %p3496_p1 = scmp.lt.s32.totalorder %s2841_s22, 3  ;;  %p3497_p2 = scmp.ge.s32.totalorder %s2841_s22, 1 }
  0x38   : > { %s3499_s13 = sshll.u32 %s2837_s21, 7  ;;  %s3500_s26 = sshll.u32 %s2982_s14, 3 }
  0x39   : > { %p3035_p7 = pnand %p3497_p2, %p3496_p1  ;;  %s3044_s15 = scalar_lea.hbm %s3465_s1, %s3499_s13 }
  0x3a   : > { %s381_s19 = scalar_lea.vmem [#allocation5], %s3500_s26  ;;  %s378_s25 = scalar_lea.sflag [#allocation6], %s2982_s14 }
  0x3b   : > { %s3498_s16 = scalar_select %p3035_p7, 1, 0 }
  0x3c   : > { %s388_s0 = sshll.u32 %s381_s19, 4  ;;  %s2725_s24 = scalar_lea.hbm %s3044_s15, 128  ;;  %s389_s0 = int_to_ptr.vmem [resolvable:$true] %s388_s0 }
  0x3d   : > { %p2726_p9 = scmp.ne.s32.totalorder %s3044_s15, %s2725_s24  ;;  %s2730_s13 = scalar_lea.hbm %s3465_s1, 256 }
  0x3e   : > { %p2731_p3 = scmp.lt.u32.totalorder %s3044_s15, %s3465_s1  ;;  %p2732_p6 = scmp.lt.u32.totalorder %s2730_s13, %s2725_s24 }
  0x3f   : > { %p2728_p11 = pnand %p2726_p9, %p2697_p5  ;;  %p2734_p10 = scmp.lt.u32.totalorder %s2725_s24, %s3044_s15 }
  0x40   : > { %p2733_p4 = por %p2732_p6, %p2731_p3 }
  0x41   : > { %p2729_p13 = pneg %p2728_p11 }
  0x42   : > { %p2735_p12 = por %p2734_p10, %p2733_p4 }
  0x44   : > { %p2736_p1 = pnand %p2735_p12, %p2729_p13 }
  0x46   : > { %2739 = shalt.err (!%p2736_p1)
}
  0x47   : > { %s2740_s14 = scalar_lea.vmem %s389_s0, 128  ;;  %s2844_s26 = smov [#allocation5]  }
  0x48   : > { %p2741_p2 = scmp.ne.s32.totalorder %s389_s0, %s2740_s14  ;;  %s2745_s21 = sshll.u32 %s2844_s26, 4  ;;  %s2746_s21 = int_to_ptr.vmem [resolvable:$false] %s2745_s21 }
  0x49   : > { %s2747_s19 = scalar_lea.vmem %s2746_s21, 256  ;;  %p2748_p8 = scmp.lt.s32.totalorder %s389_s0, %s2746_s21 }
  0x4a   : > { %p2743_p9 = pnand %p2741_p2, %p2697_p5  ;;  %p2749_p7 = scmp.lt.s32.totalorder %s2747_s19, %s2740_s14 }
  0x4c   : > { %p2744_p11 = pneg %p2743_p9  ;;  %p2750_p3 = por %p2749_p7, %p2748_p8 }
  0x4e   : > { %p2751_p6 = pnand %p2750_p3, %p2744_p11 }
  0x50   : > { %2754 = shalt.err (!%p2751_p6)
}
  0x51   : > { %2613 = dma.hbm_to_vmem [thread:$0]  (!%p2999_p0), %s3044_s15, 128, %s389_s0, %s378_s25  }
  0x52   : > { %p3501_p13 = scmp.ne.s32.totalorder %s3498_s16, 0 }
  0x53   : > { %s3071_s24 = sand.u32 (!%p3501_p13), 1, %s2825_s18   ;;  %p3502_p8 = scmp.ne.s32.totalorder (!%p3501_p13), %s3489_s29, 0 }
  0x54   : > { %397 = sbr.rel (%p3501_p13) target bundleno = 2028 (0x7ec), region = 64  ;;  %s3074_s23 = sshll.u32 (!%p3501_p13), %s3071_s24, 3 }
  0x55   : > { %s400_s13 = scalar_lea.sflag (!%p3501_p13), [#allocation3], %s3071_s24  ;;  %s403_s28 = scalar_lea.vmem (!%p3501_p13), [#allocation2], %s3074_s23 }
  0x5b   : > { %2808 = dma.done.wait (%p3502_p8), %s400_s13, 128  }
  0x5c   : > { %2810 = vsyncadd (%p3502_p8), %s400_s13, 4294967168  ;;  %s409_s0 = scalar_lea.sflag [#allocation6], %s3071_s24  ;;  %s412_s12 = scalar_lea.vmem [#allocation5], %s3074_s23 }
  0x5d   : > { %2812 = dma.done.wait (%p3502_p8), %s409_s0, 128  }
  0x5e   : > { %2814 = vsyncadd (%p3502_p8), %s409_s0, 4294967168  ;;  %v2845_v0 = vmov 0.0|0.0   ;;  %vm2846_vm0 = vmmov 0   ;;  %v2847_v1 = vmov 0.0   ;;  %v458_v2 = vld [vmem:[%s3466_s2] sm:$0xff]  ;;  %v459_v3 = vld [vmem:[%s3466_s2 + $0x8] sm:$0xff]  ;;  %v703_v30 = vlaneseq }
  0x5f   : > { %2547 = vmatprep.subr.bf16.mxu1 %v2845_v0  ;;  %2425 = vmatprep.mubr.msk.f32.mxu1 %vm2846_vm0, %v2847_v1  ;;  %v460_v4 = vld [vmem:[%s3466_s2 + $0x10] sm:$0xff]  ;;  %v2548_v5 = vpack.c.bf16 %v459_v3, %v458_v2  ;;  %v461_v6 = vld [vmem:[%s3466_s2 + $0x18] sm:$0xff]  ;;  %v537_v8 = vld [vmem:[%s3467_s3] sm:$0xff]  ;;  %vm462_vm1 = vcmask 261120   ;;  %s2849_s15 = smov 104   ;;  %s2850_s25 = smov 112  }
  0x60   : > { %2460 = vmatprep.subr.mxu0 %v2847_v1  ;;  %2462 = vmatprep.mubr.msk.f32.mxu0 %vm2846_vm0, %v2847_v1  ;;  %v2551_v7 = vpack.c.bf16 %v461_v6, %v460_v4  ;;  %v538_v9 = vld [vmem:[%s3467_s3 + $0x8] sm:$0xff]  ;;  %v539_v12 = vld [vmem:[%s3467_s3 + $0x10] sm:$0xff]  ;;  %v540_v13 = vld [vmem:[%s3467_s3 + $0x18] sm:$0xff]  ;;  %v2851_v28 = vmov 1983009808   ;;  %v3162_v34 = vshrl.u32 %v703_v30, 7 }
  0x61   : > { %2549 = vmatpush3.bf16.msra.mxu1 %v2548_v5  ;;  %v3113_v10 = vld [vmem:[%s403_s28] sm:$0xff]  ;;  %v2554_v11 = vpack.c.bf16 %v538_v9, %v537_v8  ;;  %v2557_v14 = vpack.c.bf16 %v540_v13, %v539_v12  ;;  %v457_v15 = vld [vmem:[%s412_s12] sm:$0xff]  ;;  %s2848_s28 = smov 120   ;;  %v701_v29 = vunpack.c.l.s4 %v2851_v28  ;;  %v2852_v31 = vmov 1934713408   ;;  %s2854_s29 = smov 8  }
  0x62   : > { %2550 = vmatprep.subr.bf16.mxu1 %v2845_v0  ;;  %v614_v19 = vld [vmem:[%s3468_s4] sm:$0xff]  ;;  %v615_v20 = vld [vmem:[%s3468_s4 + $0x8] sm:$0xff]  ;;  %v616_v22 = vld [vmem:[%s3468_s4 + $0x10] sm:$0xff]  ;;  %v733_v32 = vunpack.c.l.s4 %v2852_v31  ;;  %vm1126_vm2 = vcmask 64512   ;;  %s2855_s27 = smov 24   ;;  %vm1928_vm4 = vcmask 130048  }
  0x63   : > { %v2560_v21 = vpack.c.bf16 %v615_v20, %v614_v19  ;;  %v617_v23 = vld [vmem:[%s3468_s4 + $0x18] sm:$0xff]  ;;  %v702_v33 = vunpack.c.0.s8 %v701_v29  ;;  %vm1930_vm5 = vcmask 195584   ;;  %s2356_s12 = sshll.u32 %s2833_s20, 7  ;;  %s455_s21 = scalar_lea.vmem [#allocation7], %s3074_s23 }
  0x64   : > { %v2563_v25 = vpack.c.bf16 %v617_v23, %v616_v22  ;;  %v734_v37 = vunpack.c.0.s8 %v733_v32  ;;  %s2212_s19 = sshll.u32 %s455_s21, 4  ;;  %s3414_s16 = scalar_lea.hbm %s3475_s11, %s2356_s12  ;;  %s3416_s19 = int_to_ptr.vmem [resolvable:$true] %s2212_s19 }
  0x65   : > { %2552 = vmatpush3.bf16.msra.mxu1 %v2551_v7  ;;  %v3165_v38 = vsub.s32 %v702_v33, %v3162_v34  ;;  %p3503_p5 = scmp.ne.s32.totalorder %s3490_s30, 0  ;;  %s2856_s20 = smov [#allocation7]  }
  0x66   : > { %2553 = vmatprep.subr.bf16.mxu1 %v2845_v0  ;;  %v3168_v45 = vsub.s32 %v734_v37, %v3162_v34  ;;  %s2759_s23 = sshll.u32 %s2856_s20, 4  ;;  %s2760_s23 = int_to_ptr.vmem [resolvable:$false] %s2759_s23 }
  0x67   : > { %p2762_p10 = scmp.lt.s32.totalorder %s3416_s19, %s2760_s23 }
  0x68   : > { %2426 = vmatmul.mubr.msk.f32.vlgmr.msra.gmra.mrb[0].mxu1 %vm462_vm1, %v3113_v10 }
  0x69   : > { %2555 = vmatpush3.bf16.msra.mxu1 %v2554_v11  ;;  %2436 = vmatprep.mubr.msk.f32.mxu1 %vm2846_vm0, %v2847_v1 }
  0x6a   : > { %2556 = vmatprep.subr.bf16.mxu1 %v2845_v0 }
  0x6d   : > { %2558 = vmatpush3.bf16.msra.mxu1 %v2557_v14 }
  0x6e   : > { %2559 = vmatprep.subr.bf16.mxu1 %v2845_v0 }
  0x70   : > { %2437 = vmatmul.mubr.msk.f32.vlgmr.msra.gmra.mrb[2].mxu1 %vm462_vm1, %v457_v15 }
  0x71   : > { %2447 = vmatprep.mubr.msk.f32.mxu1 %vm2846_vm0, %v2847_v1  ;;  %2561 = vmatpush3.bf16.msra.mxu1 %v2560_v21 }
  0x72   : > { %2562 = vmatprep.subr.bf16.mxu1 %v2845_v0 }
  0x75   : > { %2564 = vmatpush3.bf16.msra.mxu1 %v2563_v25 }
  0x76   : > { %2450 = vmatprep.subr.mxu1 %v2847_v1 }
  0x78   : > { %2448 = vmatmul.mubr.msk.f32.vlgmr.msra.gmra.mrb[4].mxu1 %vm462_vm1, %v457_v15 }
  0x79   : > { %2452 = vmatprep.mubr.msk.f32.mxu1 %vm2846_vm0, %v2847_v1 }
 0x13b   : > { %v532_v16 = vpop.f32.mrb[0].mxu1 }
 0x13c   : > { %v3133_v17 = vmul.f32 0.35355338, %v532_v16  ;;  %v2427_v18 = vpop.f32.mrb[1].mxu1 }
 0x13e   : > { %689 = vrot.lane.b32.xlu1 %v3133_v17, %s2848_s28 }
 0x143   : > { %v610_v24 = vpop.f32.mrb[2].mxu1 }
 0x144   : > { %841 = vrot.lane.b32.xlu1 %v610_v24, %s2849_s15  ;;  %835 = vrot.lane.b32.xlu0 %v610_v24, %s2848_s28  ;;  %v2438_v26 = vpop.f32.mrb[3].mxu1 }
 0x148   : > { %695 = vrot.lane.b32.xlu1 %v3133_v17, %s2849_s15  ;;  %838 = vrot.lane.b32.xlu0 %v610_v24, %s2850_s25 }
 0x14c   : > { %692 = vrot.lane.b32.xlu0 %v3133_v17, %s2850_s25 }
 0x1b0   : > { %v690_v27 = vpop.permute.xlu1 %689 }
 0x1b6   : > { %v842_v35 = vpop.permute.xlu1 %841  ;;  %v836_v36 = vpop.permute.xlu0 %835 }
 0x1b7   : > { %v860_v39 = vcombine.low %v836_v36, %v842_v35  ;;  %v861_v40 = vcombine.high %v836_v36, %v842_v35 }
 0x1b9   : > { %v868_v46 = vrot.slane %v860_v39, %v3165_v38  ;;  %v875_v47 = vrot.slane %v861_v40, %v3165_v38 }
 0x1ba   : > { %v839_v41 = vpop.permute.xlu0 %838  ;;  %v696_v42 = vpop.permute.xlu1 %695 }
 0x1bb   : > { %v844_v43 = vcombine.low %v610_v24, %v839_v41  ;;  %v845_v44 = vcombine.high %v610_v24, %v839_v41  ;;  %v714_v50 = vcombine.low %v690_v27, %v696_v42  ;;  %v715_v51 = vcombine.high %v690_v27, %v696_v42 }
 0x1bd   : > { %v852_v48 = vrot.slane %v844_v43, %v3165_v38  ;;  %v859_v49 = vrot.slane %v845_v44, %v3165_v38  ;;  %v722_v63 = vrot.slane %v714_v50, %v3165_v38  ;;  %v729_v2 = vrot.slane %v715_v51, %v3165_v38 }
 0x1be   : > { %v693_v52 = vpop.permute.xlu0 %692 }
 0x1bf   : > { %v876_v53 = vcombine.low %v852_v48, %v868_v46  ;;  %v877_v54 = vcombine.high %v852_v48, %v868_v46  ;;  %v892_v55 = vcombine.low %v859_v49, %v875_v47  ;;  %v893_v56 = vcombine.high %v859_v49, %v875_v47 }
 0x1c0   : > { %v698_v57 = vcombine.low %v3133_v17, %v693_v52  ;;  %v699_v58 = vcombine.high %v3133_v17, %v693_v52 }
 0x1c1   : > { %v884_v59 = vrot.slane %v876_v53, %v3168_v45  ;;  %v891_v60 = vrot.slane %v877_v54, %v3168_v45  ;;  %v900_v61 = vrot.slane %v892_v55, %v3168_v45  ;;  %v907_v62 = vrot.slane %v893_v56, %v3168_v45 }
 0x1c2   : > { %v706_v3 = vrot.slane %v698_v57, %v3165_v38  ;;  %v713_v4 = vrot.slane %v699_v58, %v3165_v38  ;;  %v3224_v58 = vpop.f32.mrb[4].mxu1 }
 0x1c3   : > { %v912_v5 = vcombine.low %v884_v59, %v891_v60  ;;  %v2332_v6 = vcombine.high %v884_v59, %v891_v60  ;;  %v928_v7 = vcombine.low %v900_v61, %v907_v62  ;;  %v2333_v8 = vcombine.high %v900_v61, %v907_v62  ;;  %v2449_v59 = vpop.f32.mrb[5].mxu1 }
 0x1c4   : > { %v730_v9 = vcombine.low %v706_v3, %v722_v63  ;;  %v731_v11 = vcombine.high %v706_v3, %v722_v63  ;;  %v746_v12 = vcombine.low %v713_v4, %v729_v2  ;;  %v747_v13 = vcombine.high %v713_v4, %v729_v2 }
 0x1c5   : > { %v919_v14 = vrot.slane %v912_v5, %v3165_v38  ;;  %v927_v15 = vrot.slane %v2332_v6, %v3165_v38  ;;  %v935_v16 = vrot.slane %v928_v7, %v3165_v38  ;;  %v943_v17 = vrot.slane %v2333_v8, %v3165_v38 }
 0x1c6   : > { %v738_v18 = vrot.slane %v730_v9, %v3168_v45  ;;  %v745_v19 = vrot.slane %v731_v11, %v3168_v45  ;;  %v754_v20 = vrot.slane %v746_v12, %v3168_v45  ;;  %v761_v21 = vrot.slane %v747_v13, %v3168_v45 }
 0x1c7   : > { %v944_v22 = vcombine.low %v919_v14, %v927_v15  ;;  %v960_v23 = vcombine.low %v935_v16, %v943_v17  ;;  %v945_v24 = vcombine.high %v919_v14, %v927_v15  ;;  %v961_v25 = vcombine.high %v935_v16, %v943_v17 }
 0x1c8   : > { %v766_v26 = vcombine.low %v738_v18, %v745_v19  ;;  %v2330_v27 = vcombine.high %v738_v18, %v745_v19  ;;  %v782_v28 = vcombine.low %v754_v20, %v761_v21  ;;  %v2331_v29 = vcombine.high %v754_v20, %v761_v21 }
 0x1c9   : > { %v952_v31 = vrot.slane %v944_v22, %v3168_v45  ;;  %v968_v32 = vrot.slane %v960_v23, %v3168_v45  ;;  %v959_v33 = vrot.slane %v945_v24, %v3168_v45  ;;  %v975_v35 = vrot.slane %v961_v25, %v3168_v45 }
 0x1ca   : > { %v773_v36 = vrot.slane %v766_v26, %v3165_v38  ;;  %v781_v37 = vrot.slane %v2330_v27, %v3165_v38  ;;  %v789_v39 = vrot.slane %v782_v28, %v3165_v38  ;;  %v797_v40 = vrot.slane %v2331_v29, %v3165_v38 }
 0x1cb   : > { %v976_v41 = vcombine.low %v952_v31, %v968_v32  ;;  %v978_v42 = vcombine.low %v959_v33, %v975_v35  ;;  %v977_v54 = vcombine.high %v952_v31, %v968_v32  ;;  %v979_v56 = vcombine.high %v959_v33, %v975_v35 }
 0x1cc   : > { %v798_v43 = vcombine.low %v773_v36, %v781_v37  ;;  %v814_v44 = vcombine.low %v789_v39, %v797_v40  ;;  %v799_v46 = vcombine.high %v773_v36, %v781_v37  ;;  %v815_v47 = vcombine.high %v789_v39, %v797_v40 }
 0x1cd   : > { %2451 = vmatpush3.xpose.msk.msra.mxu1 %vm1126_vm2, %v976_v41  ;;  %2461 = vmatpush3.xpose.msk.msra.mxu0 %vm1126_vm2, %v978_v42  ;;  %v1437_v60 = vand.u32 127, %v703_v30 }
 0x1ce   : > { %2455 = vmatprep.subr.mxu1 %v2847_v1  ;;  %v806_v48 = vrot.slane %v798_v43, %v3168_v45  ;;  %v822_v49 = vrot.slane %v814_v44, %v3168_v45  ;;  %v813_v50 = vrot.slane %v799_v46, %v3168_v45  ;;  %v829_v51 = vrot.slane %v815_v47, %v3168_v45 }
 0x1cf   : > { %2470 = vmatprep.subr.mxu0 %v2847_v1  ;;  %vm1438_vm3 = vcmp.ge.s32.totalorder %v3162_v34, %v1437_v60 }
 0x1d0   : > { %v830_v52 = vcombine.low %v806_v48, %v822_v49  ;;  %v832_v53 = vcombine.low %v813_v50, %v829_v51  ;;  %v831_v55 = vcombine.high %v806_v48, %v822_v49  ;;  %v833_v57 = vcombine.high %v813_v50, %v829_v51 }
 0x1d2   : > { %2453 = vmatmul.mubr.msk.f32.vlgmr.msra.gmra.mrb[6].mxu1 %vm1126_vm2, %v830_v52  ;;  %2463 = vmatmul.mubr.msk.f32.vlgmr.msra.gmra.mrb[0].mxu0 %vm1126_vm2, %v832_v53 }
 0x1d3   : > { %2456 = vmatpush3.xpose.msk.msra.mxu1 %vm1126_vm2, %v977_v54  ;;  %2457 = vmatprep.mubr.msk.f32.mxu1 %vm2846_vm0, %v2847_v1 }
 0x1d4   : > { %2465 = vmatprep.subr.mxu1 %v2847_v1  ;;  %2472 = vmatprep.mubr.msk.f32.mxu0 %vm2846_vm0, %v2847_v1 }
 0x1d6   : > { %2458 = vmatmul.mubr.msk.f32.vlgmr.msra.gmra.mrb[8].mxu1 %vm1126_vm2, %v831_v55 }
 0x1d7   : > { %2466 = vmatpush3.xpose.msk.msra.mxu1 %vm1126_vm2, %v979_v56  ;;  %2467 = vmatprep.mubr.msk.f32.mxu1 %vm2846_vm0, %v2847_v1 }
 0x1d8   : > { %2475 = vmatprep.subr.mxu1 %v2847_v1 }
 0x1da   : > { %2468 = vmatmul.mubr.msk.f32.vlgmr.msra.gmra.mrb[10].mxu1 %vm1126_vm2, %v833_v57 }
 0x1db   : > { %2477 = vmatprep.mubr.msk.f32.mxu1 %vm2846_vm0, %v2847_v1 }
 0x2a5   : > { %v1199_v61 = vpop.f32.mrb[6].mxu1  ;;  %v1351_v62 = vpop.f32.mrb[0].mxu0 }
 0x2a6   : > { %v1439_v63 = vsel %vm1438_vm3, %v1199_v61, -1e+30  ;;  %v2454_v2 = vpop.f32.mrb[7].mxu1  ;;  %v2464_v3 = vpop.f32.mrb[1].mxu0  ;;  %v1441_v5 = vsel %vm1438_vm3, %v1351_v62, -1e+30 }
 0x2a7   : > { %v1443_v4 = vsel %vm1126_vm2, %v1439_v63, -inf  ;;  %v1449_v8 = vsel %vm1126_vm2, %v1441_v5, -inf }
 0x2a8   : > { %1444 = vmax.xlane.f32.xlu0 %v1443_v4 }
 0x2a9   : > { %v1275_v6 = vpop.f32.mrb[8].mxu1 }
 0x2aa   : > { %v1440_v7 = vsel %vm1438_vm3, %v1275_v6, -1e+30  ;;  %v2459_v30 = vpop.f32.mrb[9].mxu1 }
 0x2ab   : > { %v1446_v9 = vsel %vm1126_vm2, %v1440_v7, -inf }
 0x2ac   : > { %1450 = vmax.xlane.f32.xlu0 %v1449_v8  ;;  %1447 = vmax.xlane.f32.xlu1 %v1446_v9 }
 0x2ad   : > { %v1427_v11 = vpop.f32.mrb[10].mxu1 }
 0x2ae   : > { %v1442_v12 = vsel %vm1438_vm3, %v1427_v11, -1e+30  ;;  %v2469_v13 = vpop.f32.mrb[11].mxu1 }
 0x2af   : > { %v1452_v14 = vsel %vm1126_vm2, %v1442_v12, -inf }
 0x2b0   : > { %1453 = vmax.xlane.f32.xlu0 %v1452_v14 }
 0x2bd   : > { %981 = vrot.lane.b32.xlu1 %v3224_v58, %s2848_s28 }
 0x335   : > { %v1445_v15 = vpop.xlane.xlu0 %1444 }
 0x336   : > { %v1455_v16 = vsub.f32 %v1439_v63, %v1445_v15 }
 0x338   : > { %v1459_v17 = vmul.f32 1.442695, %v1455_v16 }
 0x339   : > { %v1451_v18 = vpop.xlane.xlu0 %1450  ;;  %v1448_v19 = vpop.xlane.xlu1 %1447 }
 0x33a   : > { %2679 = vpow2.f32 %v1459_v17  ;;  %v1457_v20 = vsub.f32 %v1441_v5, %v1451_v18  ;;  %v1456_v21 = vsub.f32 %v1440_v7, %v1448_v19 }
 0x33c   : > { %v1463_v22 = vmul.f32 1.442695, %v1457_v20  ;;  %v1461_v23 = vmul.f32 1.442695, %v1456_v21 }
 0x33d   : > { %v1454_v24 = vpop.xlane.xlu0 %1453  ;;  %v982_v36 = vpop.permute.xlu1 %981 }
 0x33e   : > { %2681 = vpow2.f32 %v1463_v22  ;;  %v1458_v34 = vsub.f32 %v1442_v12, %v1454_v24 }
 0x33f   : > { %2683 = vpow2.f32 %v1461_v23 }
 0x340   : > { %v1465_v25 = vmul.f32 1.442695, %v1458_v34 }
 0x342   : > { %2685 = vpow2.f32 %v1465_v25 }
 0x344   : > { %v3242_v26 = vpop.eup %2679 }
 0x345   : > { %v1467_v27 = vsel %vm1126_vm2, %v3242_v26, 0.0 }
 0x346   : > { %1468 = vadd.xlane.f32.xlu1 %v1467_v27  ;;  %v1933_v27 = vld [vmem:[%s3469_s5 + $0x8] sm:$0xff] }
 0x348   : > { %v3246_v28 = vpop.eup %2681 }
 0x349   : > { %v2684_v29 = vpop.eup %2683  ;;  %v1473_v31 = vsel %vm1126_vm2, %v3246_v28, 0.0 }
 0x34a   : > { %1474 = vadd.xlane.f32.xlu1 %v1473_v31  ;;  %v1470_v32 = vsel %vm1126_vm2, %v2684_v29, 0.0 }
 0x34b   : > { %1471 = vadd.xlane.f32.xlu0 %v1470_v32 }
 0x34c   : > { %v3251_v33 = vpop.eup %2685 }
 0x34d   : > { %v1476_v35 = vsel %vm1126_vm2, %v3251_v33, 0.0 }
 0x34f   : > { %1477 = vadd.xlane.f32.xlu0 %v1476_v35 }
 0x35b   : > { %987 = vrot.lane.b32.xlu1 %v3224_v58, %s2849_s15  ;;  %s2198_s15 = scalar_lea.sflag [#allocation4], %s3071_s24 }
 0x365   : > { %984 = vrot.lane.b32.xlu0 %v3224_v58, %s2850_s25  ;;  %s2853_s25 = smov 16  }
 0x3d3   : > { %v1469_v37 = vpop.xlane.xlu1 %1468 }
 0x3d4   : > { %2687 = vrcp.f32 %v1469_v37 }
 0x3d7   : > { %v1475_v39 = vpop.xlane.xlu1 %1474 }
 0x3d8   : > { %v1472_v40 = vpop.xlane.xlu0 %1471 }
 0x3d9   : > { %2689 = vrcp.f32 %v1472_v40 }
 0x3da   : > { %2691 = vrcp.f32 %v1475_v39 }
 0x3db   : > { %v988_v41 = vpop.permute.xlu1 %987 }
 0x3dc   : > { %v1478_v42 = vpop.xlane.xlu0 %1477  ;;  %v1006_v43 = vcombine.low %v982_v36, %v988_v41  ;;  %v1007_v44 = vcombine.high %v982_v36, %v988_v41 }
 0x3dd   : > { %2693 = vrcp.f32 %v1478_v42 }
 0x3de   : > { %v1014_v49 = vrot.slane %v1006_v43, %v3165_v38  ;;  %v1021_v50 = vrot.slane %v1007_v44, %v3165_v38  ;;  %v2688_v7 = vpop.eup %2687 }
 0x3df   : > { %v1483_v21 = vmul.f32 %v2688_v7, %v3242_v26  ;;  %v1932_v26 = vld [vmem:[%s3469_s5] sm:$0xff]  ;;  %v2018_v7 = vld [vmem:[%s3471_s7 + $0x8] sm:$0xff] }
 0x3e0   : > { %v985_v46 = vpop.permute.xlu0 %984 }
 0x3e1   : > { %v990_v47 = vcombine.low %v3224_v58, %v985_v46  ;;  %v991_v48 = vcombine.high %v3224_v58, %v985_v46 }
 0x3e3   : > { %v998_v51 = vrot.slane %v990_v47, %v3165_v38  ;;  %v1005_v52 = vrot.slane %v991_v48, %v3165_v38  ;;  %v2690_v12 = vpop.eup %2689 }
 0x3e4   : > { %v2692_v15 = vpop.eup %2691  ;;  %v1484_v22 = vmul.f32 %v2690_v12, %v2684_v29 }
 0x3e5   : > { %v1022_v53 = vcombine.low %v998_v51, %v1014_v49  ;;  %v1023_v54 = vcombine.high %v998_v51, %v1014_v49  ;;  %v1038_v55 = vcombine.low %v1005_v52, %v1021_v50  ;;  %v1039_v56 = vcombine.high %v1005_v52, %v1021_v50 }
 0x3e6   : > { %v1485_v34 = vmul.f32 %v2692_v15, %v3246_v28  ;;  %v2566_v28 = vpack.c.bf16 %v1933_v27, %v1932_v26  ;;  %v2102_v27 = vld [vmem:[%s3473_s9] sm:$0xff] }
 0x3e7   : > { %v1030_v57 = vrot.slane %v1022_v53, %v3168_v45  ;;  %v1037_v59 = vrot.slane %v1023_v54, %v3168_v45  ;;  %v1046_v58 = vrot.slane %v1038_v55, %v3168_v45  ;;  %v1053_v60 = vrot.slane %v1039_v56, %v3168_v45  ;;  %v2694_v20 = vpop.eup %2693  ;;  %v1934_v53 = vld [vmem:[%s3469_s5 + $0x10] sm:$0xff]  ;;  %v1935_v54 = vld [vmem:[%s3469_s5 + $0x18] sm:$0xff] }
 0x3e8   : > { %v1486_v25 = vmul.f32 %v2694_v20, %v3251_v33 }
 0x3e9   : > { %v1058_v61 = vcombine.low %v1030_v57, %v1037_v59  ;;  %v2334_v62 = vcombine.high %v1030_v57, %v1037_v59  ;;  %v1074_v63 = vcombine.low %v1046_v58, %v1053_v60  ;;  %v2335_v2 = vcombine.high %v1046_v58, %v1053_v60 }
 0x3ea   : > { %v2569_v58 = vpack.c.bf16 %v1935_v54, %v1934_v53 }
 0x3eb   : > { %v1065_v3 = vrot.slane %v1058_v61, %v3165_v38  ;;  %v1073_v4 = vrot.slane %v2334_v62, %v3165_v38  ;;  %v1081_v5 = vrot.slane %v1074_v63, %v3165_v38  ;;  %v1089_v6 = vrot.slane %v2335_v2, %v3165_v38 }
 0x3ed   : > { %v1090_v30 = vcombine.low %v1065_v3, %v1073_v4  ;;  %v1106_v8 = vcombine.low %v1081_v5, %v1089_v6  ;;  %v1091_v9 = vcombine.high %v1065_v3, %v1073_v4  ;;  %v1107_v11 = vcombine.high %v1081_v5, %v1089_v6  ;;  %v2017_v6 = vld [vmem:[%s3471_s7] sm:$0xff] }
 0x3ef   : > { %v1098_v13 = vrot.slane %v1090_v30, %v3168_v45  ;;  %v1114_v14 = vrot.slane %v1106_v8, %v3168_v45  ;;  %v1105_v16 = vrot.slane %v1091_v9, %v3168_v45  ;;  %v1121_v17 = vrot.slane %v1107_v11, %v3168_v45 }
 0x3f0   : > { %v2572_v30 = vpack.c.bf16 %v2018_v7, %v2017_v6 }
 0x3f1   : > { %v1122_v18 = vcombine.low %v1098_v13, %v1114_v14  ;;  %v1123_v19 = vcombine.high %v1098_v13, %v1114_v14  ;;  %v1124_v23 = vcombine.low %v1105_v16, %v1121_v17  ;;  %v1125_v24 = vcombine.high %v1105_v16, %v1121_v17 }
 0x3f3   : > { %2471 = vmatpush3.msra.mxu0 %v1122_v18  ;;  %2476 = vmatpush3.msra.mxu1 %v1123_v19 }
 0x3f4   : > { %2473 = vmatmul.mubr.msk.f32.vlgmr.msra.gmra.mrb[2].mxu0 %vm1126_vm2, %v1483_v21  ;;  %2478 = vmatmul.mubr.msk.f32.vlgmr.msra.gmra.mrb[12].mxu1 %vm1126_vm2, %v1484_v22 }
 0x3f5   : > { %2480 = vmatprep.subr.mxu0 %v2847_v1  ;;  %2485 = vmatprep.subr.mxu1 %v2847_v1 }
 0x3f6   : > { %2481 = vmatpush3.msra.mxu0 %v1124_v23  ;;  %2486 = vmatpush3.msra.mxu1 %v1125_v24 }
 0x3f7   : > { %2482 = vmatprep.mubr.msk.f32.mxu0 %vm2846_vm0, %v2847_v1  ;;  %2487 = vmatprep.mubr.msk.f32.mxu1 %vm2846_vm0, %v2847_v1 }
 0x3f8   : > { %2483 = vmatmul.mubr.msk.f32.vlgmr.msra.gmra.mrb[4].mxu0 %vm1126_vm2, %v1485_v34  ;;  %2488 = vmatmul.mubr.msk.f32.vlgmr.msra.gmra.mrb[14].mxu1 %vm1126_vm2, %v1486_v25  ;;  %v2019_v34 = vld [vmem:[%s3471_s7 + $0x10] sm:$0xff]  ;;  %v2020_v25 = vld [vmem:[%s3471_s7 + $0x18] sm:$0xff] }
 0x3f9   : > { %2565 = vmatprep.subr.bf16.mxu0 %v2845_v0  ;;  %2498 = vmatprep.mubr.msk.f32.mxu0 %vm2846_vm0, %v2847_v1  ;;  %v2575_v26 = vpack.c.bf16 %v2020_v25, %v2019_v34 }
 0x3fa   : > { %2571 = vmatprep.subr.bf16.mxu1 %v2845_v0  ;;  %2509 = vmatprep.mubr.msk.f32.mxu1 %vm2846_vm0, %v2847_v1 }
 0x3fb   : > { %2567 = vmatpush3.bf16.msra.mxu0 %v2566_v28  ;;  %2573 = vmatpush3.bf16.msra.mxu1 %v2572_v30  ;;  %v2103_v28 = vld [vmem:[%s3473_s9 + $0x8] sm:$0xff] }
 0x3fc   : > { %2568 = vmatprep.subr.bf16.mxu0 %v2845_v0  ;;  %2574 = vmatprep.subr.bf16.mxu1 %v2845_v0 }
 0x3ff   : > { %2570 = vmatpush3.bf16.msra.mxu0 %v2569_v58  ;;  %2576 = vmatpush3.bf16.msra.mxu1 %v2575_v26 }
 0x400   : > { %2577 = vmatprep.subr.bf16.mxu0 %v2845_v0 }
 0x4c7   : > { %v1556_v29 = vpop.f32.mrb[2].mxu0  ;;  %v1629_v31 = vpop.f32.mrb[12].mxu1 }
 0x4c8   : > { %v2474_v32 = vpop.f32.mrb[3].mxu0  ;;  %v2479_v33 = vpop.f32.mrb[13].mxu1 }
 0x4c9   : > { %v2106_v33 = vld [vmem:[%s3473_s9 + $0x20] sm:$0xff] }
 0x4cb   : > { %v1702_v35 = vpop.f32.mrb[4].mxu0  ;;  %v1775_v36 = vpop.f32.mrb[14].mxu1 }
 0x4cc   : > { %v1779_v37 = vcombine.low %v1556_v29, %v1702_v35  ;;  %v1780_v39 = vcombine.high %v1556_v29, %v1702_v35  ;;  %v1795_v40 = vcombine.low %v1629_v31, %v1775_v36  ;;  %v1796_v41 = vcombine.high %v1629_v31, %v1775_v36  ;;  %v2484_v42 = vpop.f32.mrb[5].mxu0  ;;  %v2489_v43 = vpop.f32.mrb[15].mxu1  ;;  %v2105_v31 = vld [vmem:[%s3473_s9 + $0x18] sm:$0xff]  ;;  %v2107_v35 = vld [vmem:[%s3473_s9 + $0x28] sm:$0xff] }
 0x4cd   : > { %v2578_v29 = vpack.c.bf16 %v2103_v28, %v2102_v27  ;;  %v2584_v36 = vpack.c.bf16 %v2107_v35, %v2106_v33  ;;  %v2111_v42 = vld [vmem:[%s3473_s9 + $0x48] sm:$0xff] }
 0x4ce   : > { %v1787_v44 = vrot.slane %v1779_v37, %v3165_v38  ;;  %v1794_v46 = vrot.slane %v1780_v39, %v3165_v38  ;;  %v1803_v47 = vrot.slane %v1795_v40, %v3165_v38  ;;  %v1810_v48 = vrot.slane %v1796_v41, %v3165_v38  ;;  %v2108_v37 = vld [vmem:[%s3473_s9 + $0x30] sm:$0xff]  ;;  %v2109_v39 = vld [vmem:[%s3473_s9 + $0x38] sm:$0xff]  ;;  %v2110_v41 = vld [vmem:[%s3473_s9 + $0x40] sm:$0xff] }
 0x4cf   : > { %v2587_v40 = vpack.c.bf16 %v2109_v39, %v2108_v37  ;;  %v2590_v43 = vpack.c.bf16 %v2111_v42, %v2110_v41 }
 0x4d0   : > { %v1811_v49 = vcombine.low %v1787_v44, %v1803_v47  ;;  %v1812_v50 = vcombine.high %v1787_v44, %v1803_v47  ;;  %v1827_v51 = vcombine.low %v1794_v46, %v1810_v48  ;;  %v1828_v52 = vcombine.high %v1794_v46, %v1810_v48  ;;  %v2112_v44 = vld [vmem:[%s3473_s9 + $0x50] sm:$0xff]  ;;  %v2113_v46 = vld [vmem:[%s3473_s9 + $0x58] sm:$0xff]  ;;  %v2114_v48 = vld [vmem:[%s3473_s9 + $0x60] sm:$0xff] }
 0x4d1   : > { %v2593_v47 = vpack.c.bf16 %v2113_v46, %v2112_v44 }
 0x4d2   : > { %v1819_v55 = vrot.slane %v1811_v49, %v3168_v45  ;;  %v1826_v56 = vrot.slane %v1812_v50, %v3168_v45  ;;  %v1835_v57 = vrot.slane %v1827_v51, %v3168_v45  ;;  %v1842_v59 = vrot.slane %v1828_v52, %v3168_v45  ;;  %v2115_v49 = vld [vmem:[%s3473_s9 + $0x68] sm:$0xff]  ;;  %v2350_v51 = vld [vmem:[%s3470_s6] ss:$0 sm:$0xff] }
 0x4d3   : > { %v2596_v50 = vpack.c.bf16 %v2115_v49, %v2114_v48 }
 0x4d4   : > { %v1847_v60 = vcombine.low %v1819_v55, %v1826_v56  ;;  %v2348_v61 = vcombine.high %v1819_v55, %v1826_v56  ;;  %v1863_v62 = vcombine.low %v1835_v57, %v1842_v59  ;;  %v2349_v63 = vcombine.high %v1835_v57, %v1842_v59  ;;  %v2116_v56 = vld [vmem:[%s3473_s9 + $0x70] sm:$0xff]  ;;  %v2352_v59 = vld [vmem:[%s3472_s8] ss:$0 sm:$0xff] }
 0x4d6   : > { %v1854_v2 = vrot.slane %v1847_v60, %v3165_v38  ;;  %v1862_v3 = vrot.slane %v2348_v61, %v3165_v38  ;;  %v1870_v4 = vrot.slane %v1863_v62, %v3165_v38  ;;  %v1878_v5 = vrot.slane %v2349_v63, %v3165_v38  ;;  %v2354_v62 = vld [vmem:[%s3474_s10] ss:$0 sm:$0xff] }
 0x4d8   : > { %v1880_v8 = vcombine.high %v1854_v2, %v1862_v3  ;;  %v1896_v9 = vcombine.high %v1870_v4, %v1878_v5  ;;  %v1879_v11 = vcombine.low %v1854_v2, %v1862_v3  ;;  %v1895_v12 = vcombine.low %v1870_v4, %v1878_v5 }
 0x4da   : > { %v1894_v13 = vrot.slane %v1880_v8, %v3168_v45  ;;  %v1910_v38 = vrot.slane %v1896_v9, %v3168_v45  ;;  %v1887_v14 = vrot.slane %v1879_v11, %v3168_v45  ;;  %v1903_v15 = vrot.slane %v1895_v12, %v3168_v45 }
 0x4dc   : > { %v1913_v16 = vcombine.low %v1894_v13, %v1910_v38  ;;  %v1912_v17 = vcombine.high %v1887_v14, %v1903_v15  ;;  %v1914_v18 = vcombine.high %v1894_v13, %v1910_v38  ;;  %v1911_v19 = vcombine.low %v1887_v14, %v1903_v15 }
 0x4de   : > { %1920 = vrot.lane.b32.xlu0 %v1913_v16, %s2853_s25  ;;  %1916 = vrot.lane.b32.xlu1 %v1912_v17, %s2854_s29  ;;  %s2755_s25 = scalar_lea.vmem %s3416_s19, 128  ;;  %s2761_s29 = scalar_lea.vmem %s2760_s23, 256 }
 0x4df   : > { %p2756_p0 = scmp.ne.s32.totalorder %s3416_s19, %s2755_s25  ;;  %p2763_p12 = scmp.lt.s32.totalorder %s2761_s29, %s2755_s25 }
 0x4e1   : > { %p2757_p7 = pnand %p2756_p0, %p3503_p5  ;;  %p2764_p1 = por %p2763_p12, %p2762_p10 }
 0x4e2   : > { %1924 = vrot.lane.b32.xlu1 %v1914_v18, %s2855_s27 }
 0x4e3   : > { %p2758_p4 = pneg %p2757_p7 }
 0x4e5   : > { %p2765_p2 = pnand %p2764_p1, %p2758_p4 }
 0x550   : > { %v1917_v20 = vpop.permute.xlu1 %1916  ;;  %v1921_v21 = vpop.permute.xlu0 %1920 }
 0x551   : > { %v1927_v22 = vsel %vm1126_vm2, %v1911_v19, %v1917_v20 }
 0x552   : > { %v1929_v45 = vsel %vm1928_vm4, %v1927_v22, %v1921_v21 }
 0x554   : > { %v1925_v23 = vpop.permute.xlu1 %1924 }
 0x555   : > { %v1931_v24 = vsel %vm1930_vm5, %v1929_v45, %v1925_v23 }
 0x556   : > { %2499 = vmatmul.mubr.msk.f32.vlgmr.msra.gmra.mrb[6].mxu0 %vm462_vm1, %v1931_v24 }
 0x557   : > { %2544 = vmatprep.mubr.msk.f32.mxu0 %vm2846_vm0, %v2847_v1  ;;  %v2104_v1 = vld [vmem:[%s3473_s9 + $0x10] sm:$0xff]  ;;  %2579 = vmatpush3.bf16.msra.mxu0 %v2578_v29 }
 0x558   : > { %v2581_v32 = vpack.c.bf16 %v2105_v31, %v2104_v1  ;;  %2580 = vmatprep.subr.bf16.mxu0 %v2845_v0 }
 0x55b   : > { %2582 = vmatpush3.bf16.msra.mxu0 %v2581_v32 }
 0x55c   : > { %2583 = vmatprep.subr.bf16.mxu0 %v2845_v0 }
 0x55f   : > { %2585 = vmatpush3.bf16.msra.mxu0 %v2584_v36 }
 0x560   : > { %2586 = vmatprep.subr.bf16.mxu0 %v2845_v0 }
 0x563   : > { %2588 = vmatpush3.bf16.msra.mxu0 %v2587_v40 }
 0x564   : > { %2589 = vmatprep.subr.bf16.mxu0 %v2845_v0 }
 0x567   : > { %2591 = vmatpush3.bf16.msra.mxu0 %v2590_v43 }
 0x568   : > { %2592 = vmatprep.subr.bf16.mxu0 %v2845_v0 }
 0x56b   : > { %2594 = vmatpush3.bf16.msra.mxu0 %v2593_v47 }
 0x56c   : > { %2595 = vmatprep.subr.bf16.mxu0 %v2845_v0 }
 0x56f   : > { %2597 = vmatpush3.bf16.msra.mxu0 %v2596_v50 }
 0x570   : > { %2598 = vmatprep.subr.bf16.mxu0 %v2845_v0  ;;  %v2117_v0 = vld [vmem:[%s3473_s9 + $0x78] sm:$0xff] }
 0x571   : > { %v2599_v57 = vpack.c.bf16 %v2117_v0, %v2116_v56 }
 0x573   : > { %2600 = vmatpush3.bf16.msra.mxu0 %v2599_v57 }
 0x629   : > { %v2012_v52 = vpop.f32.mrb[6].mxu0 }
 0x62a   : > { %v2013_v53 = vadd.f32 %v2350_v51, %v2012_v52  ;;  %v2500_v54 = vpop.f32.mrb[7].mxu0 }
 0x62c   : > { %v2016_v55 = vadd.f32 %v2013_v53, %v3113_v10 }
 0x62e   : > { %2510 = vmatmul.mubr.msk.f32.vlgmr.msra.gmra.mrb[16].mxu1 %vm462_vm1, %v2016_v55 }
 0x701   : > { %v2097_v58 = vpop.f32.mrb[16].mxu1 }
 0x702   : > { %v2098_v60 = vadd.f32 %v2352_v59, %v2097_v58  ;;  %v2511_v10 = vpop.f32.mrb[17].mxu1 }
 0x704   : > { %v2101_v61 = vmax.f32 %v2098_v60, 0.0 }
 0x706   : > { %2545 = vmatmul.mubr.f32.vlgmr.msra.gmra.mrb[8].mxu0 %v2101_v61 }
 0x7d9   : > { %v2191_v63 = vpop.f32.mrb[8].mxu0 }
 0x7da   : > { %v2192_v2 = vadd.f32 %v2354_v62, %v2191_v63  ;;  %v2546_v3 = vpop.f32.mrb[9].mxu0 }
 0x7dc   : > { %v2195_v4 = vadd.f32 %v2192_v2, %v2016_v55 }
 0x7de   : > { %2196 = vst.msk [vmem:[%s455_s21] sm:$0xff] %vm462_vm1, %v2195_v4 }
 0x7df   : > { %2768 = shalt.err (!%p2765_p2)
}
 0x7e0   : > { %s2769_s24 = scalar_lea.hbm %s3414_s16, 128  ;;  %s2773_s14 = scalar_lea.hbm %s3475_s11, 256 }
 0x7e1   : > { %p2770_p9 = scmp.ne.s32.totalorder %s3414_s16, %s2769_s24  ;;  %p2774_p6 = scmp.lt.u32.totalorder %s3414_s16, %s3475_s11 }
 0x7e2   : > { %p2775_p13 = scmp.lt.u32.totalorder %s2773_s14, %s2769_s24  ;;  %p2777_p0 = scmp.lt.u32.totalorder %s2769_s24, %s3414_s16 }
 0x7e3   : > { %p2771_p11 = pnand %p2770_p9, %p3503_p5 }
 0x7e4   : > { %p2776_p8 = por %p2775_p13, %p2774_p6 }
 0x7e5   : > { %p2772_p3 = pneg %p2771_p11 }
 0x7e6   : > { %p2778_p7 = por %p2777_p0, %p2776_p8 }
 0x7e8   : > { %p2779_p4 = pnand %p2778_p7, %p2772_p3 }
 0x7ea   : > { %2782 = shalt.err (!%p2779_p4)
}
 0x7eb   : > { %2605 = dma.vmem_to_hbm [thread:$0]  (%p3503_p5), %s3416_s19, 128, %s3414_s16, %s2198_s15  }
 0x7ec PF: > { %s3504_s21 = sld [smem:[#allocation15_spill]]  ;;  %s2224_s13 = sand.u32 1, %s2821_s17  }
 0x7ed   : > { %p3506_p12 = scmp.ge.s32.totalorder %s2841_s22, 2  ;;  %s2225_s0 = scalar_lea.sflag [#allocation4], %s2224_s13 }
 0x7f2   : > { %p3505_p10 = scmp.ne.s32.totalorder %s3504_s21, 0 }
 0x7f4   : > { %p2615_p1 = pnand %p3506_p12, %p3505_p10 }
 0x7f6   : > { %2816 = dma.done.wait (!%p2615_p1), %s2225_s0, 128  }
 0x7f7   : > { %2818 = vsyncadd (!%p2615_p1), %s2225_s0, 4294967168  ;;  %s30_s22 = sadd.s32 1, %s2841_s22   ;;  %s3507_s25 = sld [smem:[#allocation11_spill]] }
 0x7f8   : > { %p27_p2 = scmp.ge.s32.totalorder %s30_s22, 4   ;;  %s3508_s19 = sld [smem:[#allocation14_spill]] }
 0x7f9   : > { %s3509_s20 = sld [smem:[#allocation12_spill]]  ;;  %s3510_s21 = sld [smem:[#allocation13_spill]] }
 0x7fa   : > { %s3511_s17 = smov %s2825_s18  ;;  %29 = sbr.rel (!%p27_p2) target bundleno = 10 (0xa), region = 122 }
 0x7fd   : > { %s3512_s18 = smov %s3507_s25 }
 0x801   :  { %2230 = vsyncpa [#allocation3], 1 }
 0x802   :  { %2232 = vsyncpa [#allocation3 + $0x1], 1 }
 0x803   :  { %2233 = vsyncpa [#allocation6], 1 }
 0x804   :  { %2235 = vsyncpa [#allocation6 + $0x1], 1 }
 0x805   :  { %2236 = vsyncpa [#allocation4], 1 }
 0x806   :  { %2238 = vsyncpa [#allocation4 + $0x1], 1 }

</bundles_post_ra>
